<compile_context>
chip_gen: v7x
topology: tpu7x:2x2x1
jax: 0.10.0
libtpu: 0.0.40
codegen_flags: <defaults>
</compile_context>

<pallas_src>
import functools

import jax
import jax.numpy as jnp
from jax import lax
from jax.experimental import pallas as pl
from jax.experimental.pallas import tpu as pltpu


def _round_up(x, m):
    return ((x + m - 1) // m) * m


# ----------------------------------------------------------------------------
# Fused kernel: per-(batch, q-tile) grid step
#   cached K/V projections -> stacked Q projection -> per-head scaled-dot-product
#   softmax attention -> head outputs into a concat scratch -> output projection.
# ----------------------------------------------------------------------------
def _fused_mha_kernel(q_ref, k_ref, v_ref, wq_ref, wk_ref, wv_ref, pw_ref, pb_ref,
                      *refs, num_head, dk, dv, emit_attn, compute_dtype):
    if emit_attn:
        out_ref, attn_ref, kp_c, vp_c, cat_c = refs
    else:
        out_ref, kp_c, vp_c, cat_c = refs
        attn_ref = None

    qi = pl.program_id(1)

    # Refresh the K/V projection cache only on the first q-tile of each batch.
    # qi is the innermost "arbitrary" axis, so qi == 0 is always visited first for
    # every batch index (also under megacore sharding, which only splits B).
    @pl.when(qi == 0)
    def _():
        k = k_ref[0].astype(compute_dtype)                       # (Nk, D)
        v = v_ref[0].astype(compute_dtype)                       # (Nk, D)
        kp_c[...] = jnp.dot(k, wk_ref[...],
                            preferred_element_type=jnp.float32).astype(kp_c.dtype)
        vp_c[...] = jnp.dot(v, wv_ref[...],
                            preferred_element_type=jnp.float32).astype(vp_c.dtype)

    # Stacked Q projection (all heads at once). The 1/sqrt(num_dim) softmax scale is
    # already folded into wq in the wrapper.
    q = q_ref[0].astype(compute_dtype)                           # (TQ, D)
    qp = jnp.dot(q, wq_ref[...],
                 preferred_element_type=jnp.float32).astype(compute_dtype)  # (TQ, H*Dk)

    kp = kp_c[...]                                               # (Nk, H*Dk)
    vp = vp_c[...]                                               # (Nk, H*Dv)

    # TODO(synk): for long Nk, add an Nk tile axis with flash-style online softmax
    # (running max/denominator in scratch) instead of materializing (TQ, Nk) per head.
    # TODO(synk): per-head 16-lane slices could be avoided with a head-major batched
    # dot_general, at the cost of an extra relayout of the projections.
    for h in range(num_head):                                    # unrolled at trace time
        qh = qp[:, h * dk:(h + 1) * dk]                          # (TQ, Dk)
        kh = kp[:, h * dk:(h + 1) * dk]                          # (Nk, Dk)
        vh = vp[:, h * dv:(h + 1) * dv]                          # (Nk, Dv)

        # scores: contract last dims directly (no explicit transpose of kh)
        s = lax.dot_general(qh, kh, (((1,), (1,)), ((), ())),
                            preferred_element_type=jnp.float32)  # (TQ, Nk)

        # TODO(synk): dropout on the raw scores is identity in eval mode (rate ignored).

        # softmax over Nk, kept in f32 (no bf16 VPU/EUP on v5e).
        s_max = jnp.max(s, axis=-1, keepdims=True)
        e = jnp.exp(s - s_max)
        denom = jnp.sum(e, axis=-1, keepdims=True)
        r = pl.reciprocal(denom, approx=True)                    # EUP slot (free-ish)
        r = r * (2.0 - denom * r)                                # one Newton step -> ~fp32
        p = e * r                                                # (TQ, Nk)

        if emit_attn:
            attn_ref[h, 0] = p.astype(attn_ref.dtype)

        ho = jnp.dot(p.astype(compute_dtype), vh,
                     preferred_element_type=jnp.float32)         # (TQ, Dv)
        # slice-store into the concat scratch instead of jnp.concatenate
        cat_c[:, h * dv:(h + 1) * dv] = ho.astype(cat_c.dtype)

    # output projection + bias, lane-dense (TQ, D) store
    out_ref[0] = (jnp.dot(cat_c[...], pw_ref[...],
                          preferred_element_type=jnp.float32)
                  + pb_ref[...]).astype(out_ref.dtype)
    # TODO(synk): final dropout is identity in eval mode.


# ----------------------------------------------------------------------------
# VMEM-budget-aware q-tile selection (v7x has only 64 MiB VMEM per TensorCore).
# ----------------------------------------------------------------------------
def _vmem_capacity_bytes():
    try:
        return int(pltpu.get_tpu_info().vmem_capacity_bytes)
    except Exception:
        return 64 * 1024 * 1024        # conservative default (v7x per-TC VMEM)


def _pick_q_tile(Nq, Nk, D, H, Dk, Dv, attn_bytes, compute_bytes, vmem_cap):
    """Largest sublane-aligned q-tile whose per-step working set fits the budget."""
    def step_bytes(tq):
        db = 2                                                   # default double buffering
        q_blk = tq * D * 4 * db
        out_blk = tq * D * 4 * db
        kv_blk = 2 * Nk * D * 4 * db
        attn_blk = H * tq * Nk * attn_bytes * db
        weights = ((2 * D * H * Dk + D * H * Dv + H * Dv * D) * compute_bytes
                   + D * 4) * db
        scratch = (Nk * H * Dk + Nk * H * Dv + tq * H * Dv) * compute_bytes
        live = 3 * tq * Nk * 4 + tq * (H * Dk + H * Dv) * 4      # s/e/p + projections
        return q_blk + out_blk + kv_blk + attn_blk + weights + scratch + live

    budget = int(0.8 * vmem_cap)
    nq_r = _round_up(Nq, 8)
    cands = sorted({min(t, nq_r) for t in (512, 256, 128, 64, 32, 16, 8)}, reverse=True)
    for t in cands:
        if step_bytes(t) <= budget:
            return t
    return cands[-1]


# ----------------------------------------------------------------------------
# Wrapper
# ----------------------------------------------------------------------------
def multi_head_attention(query, key, value, w_q, w_k, w_v, proj_w, proj_b,
                         *, num_dim, q_tile=None, return_attn=True,
                         attn_dtype=jnp.float32, use_bf16=False):
    """Same semantics as MultiHeadAttention.forward (eval mode).

    Returns:
      out             : (B, Nq, num_dim)
      attns (optional): (num_head * B, Nq, Nk)  head-major, batch-minor (like torch)
    """
    B, Nq, D = query.shape
    _, Nk, _ = key.shape
    H, _, Dk = w_q.shape
    Dv = w_v.shape[-1]
    inv_scale = 1.0 / float(num_dim) ** 0.5

    compute_dtype = jnp.bfloat16 if use_bf16 else jnp.float32
    out_dtype = query.dtype

    # Stack head weights: (H, D, Dx) -> (D, H*Dx) so column block h is head h.
    # Fold the softmax scale into the stacked Q weights (zero in-kernel cost).
    wq_s = (jnp.transpose(w_q, (1, 0, 2)).reshape(D, H * Dk)
            * jnp.asarray(inv_scale, w_q.dtype)).astype(compute_dtype)
    wk_s = jnp.transpose(w_k, (1, 0, 2)).reshape(D, H * Dk).astype(compute_dtype)
    wv_s = jnp.transpose(w_v, (1, 0, 2)).reshape(D, H * Dv).astype(compute_dtype)
    pw = proj_w.astype(compute_dtype)
    pb = proj_b.astype(jnp.float32)

    vmem_cap = _vmem_capacity_bytes()
    attn_bytes = jnp.dtype(attn_dtype).itemsize if return_attn else 0
    comp_bytes = jnp.dtype(compute_dtype).itemsize
    TQ = q_tile if q_tile is not None else _pick_q_tile(
        Nq, Nk, D, H, Dk, Dv, attn_bytes, comp_bytes, vmem_cap)
    TQ = max(8, (TQ // 8) * 8)

    # Pad Nq to a multiple of TQ (zero rows; sliced off below) -> no reliance on
    # masked partial-block writeback for either output.
    Nq_pad = _round_up(Nq, TQ)
    if Nq_pad != Nq:
        query = jnp.pad(query, ((0, 0), (0, Nq_pad - Nq), (0, 0)))
    n_q_tiles = Nq_pad // TQ

    kernel = functools.partial(_fused_mha_kernel, num_head=H, dk=Dk, dv=Dv,
                               emit_attn=return_attn, compute_dtype=compute_dtype)

    in_specs = [
        pl.BlockSpec((1, TQ, D), lambda b, qi: (b, qi, 0)),      # query tile
        pl.BlockSpec((1, Nk, D), lambda b, qi: (b, 0, 0)),       # key   (resident over qi)
        pl.BlockSpec((1, Nk, D), lambda b, qi: (b, 0, 0)),       # value (resident over qi)
        pl.BlockSpec((D, H * Dk), lambda b, qi: (0, 0)),         # stacked, scaled w_q
        pl.BlockSpec((D, H * Dk), lambda b, qi: (0, 0)),         # stacked w_k
        pl.BlockSpec((D, H * Dv), lambda b, qi: (0, 0)),         # stacked w_v
        pl.BlockSpec((H * Dv, D), lambda b, qi: (0, 0)),         # proj W
        pl.BlockSpec((1, D), lambda b, qi: (0, 0)),              # proj bias
    ]
    # NOTE: the weight / K / V blocks never change within a batch; Pallas does not
    # re-fetch blocks whose index is unchanged, so their DMA cost is paid once per b.

    out_spec_main = pl.BlockSpec((1, TQ, D), lambda b, qi: (b, qi, 0))
    if return_attn:
        out_shape = (
            jax.ShapeDtypeStruct((B, Nq_pad, D), out_dtype),
            jax.ShapeDtypeStruct((H, B, Nq_pad, Nk), attn_dtype),
        )
        out_specs = [
            out_spec_main,
            pl.BlockSpec((H, 1, TQ, Nk), lambda b, qi: (0, b, qi, 0)),
        ]
    else:
        out_shape = jax.ShapeDtypeStruct((B, Nq_pad, D), out_dtype)
        out_specs = out_spec_main

    scratch_shapes = [
        pltpu.VMEM((Nk, H * Dk), compute_dtype),                 # cached K projection
        pltpu.VMEM((Nk, H * Dv), compute_dtype),                 # cached V projection
        pltpu.VMEM((TQ, H * Dv), compute_dtype),                 # concat scratch
    ]

    result = pl.pallas_call(
        kernel,
        out_shape=out_shape,
        grid_spec=pltpu.PrefetchScalarGridSpec(
            num_scalar_prefetch=0,
            grid=(B, n_q_tiles),
            in_specs=in_specs,
            out_specs=out_specs,
            scratch_shapes=scratch_shapes),
        compiler_params=pltpu.CompilerParams(
            # B parallel (megacore shards batches on v7x), qi arbitrary (required for
            # the persistent K/V projection cache).
            dimension_semantics=("parallel", "arbitrary"),
            vmem_limit_bytes=min(int(0.9 * vmem_cap), 128 * 1024 * 1024)),
    )(query, key, value, wq_s, wk_s, wv_s, pw, pb)

    if return_attn:
        out, attn_hb = result
        if Nq_pad != Nq:
            out = out[:, :Nq]
            attn_hb = attn_hb[:, :, :Nq]
        attns = attn_hb.reshape(H * B, Nq, Nk)
        return out, attns
    out = result
    if Nq_pad != Nq:
        out = out[:, :Nq]
    return out


# ----------------------------------------------------------------------------
# Pure-JAX reference (mirrors the PyTorch forward) for a sanity check.
# ----------------------------------------------------------------------------
def _reference(query, key, value, w_q, w_k, w_v, proj_w, proj_b, *, num_dim):
    H = w_q.shape[0]
    B, Nq, D = query.shape
    Nk = key.shape[1]
    Dk, Dv = w_q.shape[-1], w_v.shape[-1]

    qs = jnp.einsum('bqd,hde->hbqe', query, w_q).reshape(H * B, Nq, Dk)
    ks = jnp.einsum('bkd,hde->hbke', key, w_k).reshape(H * B, Nk, Dk)
    vs = jnp.einsum('bkd,hde->hbke', value, w_v).reshape(H * B, Nk, Dv)

    scores = jnp.einsum('nqe,nke->nqk', qs, ks) / (float(num_dim) ** 0.5)
    attn = jax.nn.softmax(scores, axis=-1)
    outs = jnp.einsum('nqk,nkv->nqv', attn, vs)                    # (H*B, Nq, Dv)
    outs = outs.reshape(H, B, Nq, Dv).transpose(1, 2, 0, 3).reshape(B, Nq, H * Dv)
    outs = outs @ proj_w + proj_b[0]
    return outs, attn


if __name__ == "__main__":
    # small, module-consistent shapes
    batch = 2
    num_q = 8
    num_kv = 8
    num_head = 4
    num_dim = 32
    num_dim_k = 16
    num_dim_v = 16

    key0 = jax.random.PRNGKey(0)
    k_q, k_k, k_v, k_wq, k_wk, k_wv, k_pw, k_pb = jax.random.split(key0, 8)

    query = jax.random.normal(k_q, (batch, num_q, num_dim), jnp.float32)
    key_t = jax.random.normal(k_k, (batch, num_kv, num_dim), jnp.float32)
    value = jax.random.normal(k_v, (batch, num_kv, num_dim), jnp.float32)

    # deterministic xavier-normal-style init for the head projection weights
    def xavier(k, shape):
        fan_in, fan_out = shape[-2], shape[-1]
        std = (2.0 / (fan_in + fan_out)) ** 0.5
        return std * jax.random.normal(k, shape, jnp.float32)

    w_q = xavier(k_wq, (num_head, num_dim, num_dim_k))
    w_k = xavier(k_wk, (num_head, num_dim, num_dim_k))
    w_v = xavier(k_wv, (num_head, num_dim, num_dim_v))

    # output projection Linear(num_head*num_dim_v -> num_dim), stored as (in, out)
    proj_w = xavier(k_pw, (num_head * num_dim_v, num_dim))
    proj_b = 0.01 * jax.random.normal(k_pb, (1, num_dim), jnp.float32)

    ref_out, ref_attn = _reference(
        query, key_t, value, w_q, w_k, w_v, proj_w, proj_b, num_dim=num_dim)

    # 1) fp32 path with attention maps: exact-parity configuration
    out, attns = multi_head_attention(
        query, key_t, value, w_q, w_k, w_v, proj_w, proj_b, num_dim=num_dim)
    out = jax.block_until_ready(out)
    attns = jax.block_until_ready(attns)

    assert out.shape == (batch, num_q, num_dim)
    assert attns.shape == (num_head * batch, num_q, num_kv)
    assert jnp.allclose(out, ref_out, atol=1e-4, rtol=1e-4)
    assert jnp.allclose(attns, ref_attn, atol=1e-5, rtol=1e-5)

    # 2) fast configuration: bf16 MXU operands, no attention-map writeback
    out_fast = multi_head_attention(
        query, key_t, value, w_q, w_k, w_v, proj_w, proj_b, num_dim=num_dim,
        return_attn=False, use_bf16=True)
    out_fast = jax.block_until_ready(out_fast)

    assert out_fast.shape == (batch, num_q, num_dim)
    assert bool(jnp.all(jnp.isfinite(out_fast)))
    assert jnp.allclose(out_fast, ref_out, atol=1e-1, rtol=1e-1)

    print("KERNEL_OK")
</pallas_src>

<mosaic_0001>
module attributes {stable_mosaic.version = 11 : i64} {
  func.func @_fused_mha_kernel(%arg0: i32, %arg1: i32, %arg2: memref<1x8x32xf32, #tpu.memory_space<vmem>>, %arg3: memref<1x8x32xf32, #tpu.memory_space<vmem>>, %arg4: memref<1x8x32xf32, #tpu.memory_space<vmem>>, %arg5: memref<32x64xf32, #tpu.memory_space<vmem>>, %arg6: memref<32x64xf32, #tpu.memory_space<vmem>>, %arg7: memref<32x64xf32, #tpu.memory_space<vmem>>, %arg8: memref<64x32xf32, #tpu.memory_space<vmem>>, %arg9: memref<1x32xf32, #tpu.memory_space<vmem>>, %arg10: memref<1x8x32xf32, #tpu.memory_space<vmem>>, %arg11: memref<4x1x8x8xf32, #tpu.memory_space<vmem>>, %arg12: memref<8x64xf32, #tpu.memory_space<vmem>>, %arg13: memref<8x64xf32, #tpu.memory_space<vmem>>, %arg14: memref<8x64xf32, #tpu.memory_space<vmem>>) attributes {dimension_semantics = [#tpu.dimension_semantics<parallel>, #tpu.dimension_semantics<arbitrary>], iteration_bounds = array<i64: 2, 1>, scalar_prefetch = 0 : i64, scratch_operands = 3 : i64, tpu.core_type = #tpu.core_type<tc>, window_params = [{transform_indices = @transform_0, window_bounds = array<i64: 1, 8, 32>}, {transform_indices = @transform_1, window_bounds = array<i64: 1, 8, 32>}, {transform_indices = @transform_2, window_bounds = array<i64: 1, 8, 32>}, {pipeline_mode = #tpu.pipeline_mode<synchronous>, transform_indices = @transform_3, window_bounds = array<i64: 32, 64>}, {pipeline_mode = #tpu.pipeline_mode<synchronous>, transform_indices = @transform_4, window_bounds = array<i64: 32, 64>}, {pipeline_mode = #tpu.pipeline_mode<synchronous>, transform_indices = @transform_5, window_bounds = array<i64: 32, 64>}, {pipeline_mode = #tpu.pipeline_mode<synchronous>, transform_indices = @transform_6, window_bounds = array<i64: 64, 32>}, {pipeline_mode = #tpu.pipeline_mode<synchronous>, transform_indices = @transform_7, window_bounds = array<i64: 1, 32>}, {transform_indices = @transform_8, window_bounds = array<i64: 1, 8, 32>}, {transform_indices = @transform_9, window_bounds = array<i64: 4, 1, 8, 8>}]} {
    %c0_i32 = arith.constant 0 : i32
    %0 = arith.cmpi eq, %arg1, %c0_i32 : i32
    %1 = arith.extui %0 : i1 to i32
    %c0_i32_0 = arith.constant 0 : i32
    %2 = arith.cmpi ne, %1, %c0_i32_0 : i32
    scf.if %2 {
      %c0_57 = arith.constant 0 : index
      %c0_58 = arith.constant 0 : index
      %c0_59 = arith.constant 0 : index
      %110 = vector.load %arg3[%c0_57, %c0_58, %c0_59] : memref<1x8x32xf32, #tpu.memory_space<vmem>>, vector<1x8x32xf32>
      %111 = vector.shape_cast %110 : vector<1x8x32xf32> to vector<8x32xf32>
      %c0_60 = arith.constant 0 : index
      %c0_61 = arith.constant 0 : index
      %c0_62 = arith.constant 0 : index
      %112 = vector.load %arg4[%c0_60, %c0_61, %c0_62] : memref<1x8x32xf32, #tpu.memory_space<vmem>>, vector<1x8x32xf32>
      %113 = vector.shape_cast %112 : vector<1x8x32xf32> to vector<8x32xf32>
      %c0_63 = arith.constant 0 : index
      %c0_64 = arith.constant 0 : index
      %114 = vector.load %arg6[%c0_63, %c0_64] : memref<32x64xf32, #tpu.memory_space<vmem>>, vector<32x64xf32>
      %cst_65 = arith.constant dense<0.000000e+00> : vector<8x64xf32>
      %115 = tpu.matmul %111, %114, %cst_65 {dimension_numbers = #tpu.dot_dimension_numbers<[1], [0], [0], [1], [0, 0, 1, 1], [], []>} : vector<8x32xf32>, vector<32x64xf32>, vector<8x64xf32> -> vector<8x64xf32>
      %c0_66 = arith.constant 0 : index
      %c0_67 = arith.constant 0 : index
      %116 = vector.load %arg12[%c0_66, %c0_67] : memref<8x64xf32, #tpu.memory_space<vmem>>, vector<8x64xf32>
      tpu.vector_store %arg12[%c0_66, %c0_67], %115 {strides = array<i32>} : memref<8x64xf32, #tpu.memory_space<vmem>>, vector<8x64xf32>,
      %c0_68 = arith.constant 0 : index
      %c0_69 = arith.constant 0 : index
      %117 = vector.load %arg7[%c0_68, %c0_69] : memref<32x64xf32, #tpu.memory_space<vmem>>, vector<32x64xf32>
      %cst_70 = arith.constant dense<0.000000e+00> : vector<8x64xf32>
      %118 = tpu.matmul %113, %117, %cst_70 {dimension_numbers = #tpu.dot_dimension_numbers<[1], [0], [0], [1], [0, 0, 1, 1], [], []>} : vector<8x32xf32>, vector<32x64xf32>, vector<8x64xf32> -> vector<8x64xf32>
      %c0_71 = arith.constant 0 : index
      %c0_72 = arith.constant 0 : index
      %119 = vector.load %arg13[%c0_71, %c0_72] : memref<8x64xf32, #tpu.memory_space<vmem>>, vector<8x64xf32>
      tpu.vector_store %arg13[%c0_71, %c0_72], %118 {strides = array<i32>} : memref<8x64xf32, #tpu.memory_space<vmem>>, vector<8x64xf32>,
    } else {
    }
    %c0 = arith.constant 0 : index
    %c0_1 = arith.constant 0 : index
    %c0_2 = arith.constant 0 : index
    %3 = vector.load %arg2[%c0, %c0_1, %c0_2] : memref<1x8x32xf32, #tpu.memory_space<vmem>>, vector<1x8x32xf32>
    %4 = vector.shape_cast %3 : vector<1x8x32xf32> to vector<8x32xf32>
    %c0_3 = arith.constant 0 : index
    %c0_4 = arith.constant 0 : index
    %5 = vector.load %arg5[%c0_3, %c0_4] : memref<32x64xf32, #tpu.memory_space<vmem>>, vector<32x64xf32>
    %cst = arith.constant dense<0.000000e+00> : vector<8x64xf32>
    %6 = tpu.matmul %4, %5, %cst {dimension_numbers = #tpu.dot_dimension_numbers<[1], [0], [0], [1], [0, 0, 1, 1], [], []>} : vector<8x32xf32>, vector<32x64xf32>, vector<8x64xf32> -> vector<8x64xf32>
    %c0_5 = arith.constant 0 : index
    %c0_6 = arith.constant 0 : index
    %7 = vector.load %arg12[%c0_5, %c0_6] : memref<8x64xf32, #tpu.memory_space<vmem>>, vector<8x64xf32>
    %c0_7 = arith.constant 0 : index
    %c0_8 = arith.constant 0 : index
    %8 = vector.load %arg13[%c0_7, %c0_8] : memref<8x64xf32, #tpu.memory_space<vmem>>, vector<8x64xf32>
    %9 = vector.extract_strided_slice %6 {offsets = [0, 0], sizes = [8, 16], strides = [1, 1]} : vector<8x64xf32> to vector<8x16xf32>
    %10 = vector.extract_strided_slice %7 {offsets = [0, 0], sizes = [8, 16], strides = [1, 1]} : vector<8x64xf32> to vector<8x16xf32>
    %11 = vector.extract_strided_slice %8 {offsets = [0, 0], sizes = [8, 16], strides = [1, 1]} : vector<8x64xf32> to vector<8x16xf32>
    %cst_9 = arith.constant dense<0.000000e+00> : vector<8x8xf32>
    %12 = tpu.matmul %9, %10, %cst_9 {dimension_numbers = #tpu.dot_dimension_numbers<[1], [1], [0], [0], [0, 0, 1, 0], [], []>} : vector<8x16xf32>, vector<8x16xf32>, vector<8x8xf32> -> vector<8x8xf32>
    %cst_10 = arith.constant dense<0xFF800000> : vector<8xf32>
    %13 = vector.multi_reduction <maximumf>, %12, %cst_10 [1] : vector<8x8xf32> to vector<8xf32>
    %14 = vector.shape_cast %13 : vector<8xf32> to vector<8x1xf32>
    %15 = vector.broadcast %14 : vector<8x1xf32> to vector<8x8xf32>
    %16 = arith.subf %12, %15 : vector<8x8xf32>
    %17 = math.exp %16 : vector<8x8xf32>
    %cst_11 = arith.constant dense<0.000000e+00> : vector<8xf32>
    %18 = vector.multi_reduction <add>, %17, %cst_11 [1] : vector<8x8xf32> to vector<8xf32>
    %19 = vector.shape_cast %18 : vector<8xf32> to vector<8x1xf32>
    %20 = tpu.reciprocal %19 {approx = true} : vector<8x1xf32> -> vector<8x1xf32>
    %21 = arith.mulf %19, %20 : vector<8x1xf32>
    %cst_12 = arith.constant 2.000000e+00 : f32
    %22 = vector.broadcast %cst_12 : f32 to vector<8x1xf32>
    %23 = arith.subf %22, %21 : vector<8x1xf32>
    %24 = arith.mulf %20, %23 : vector<8x1xf32>
    %25 = vector.broadcast %24 : vector<8x1xf32> to vector<8x8xf32>
    %26 = arith.mulf %17, %25 : vector<8x8xf32>
    %c0_13 = arith.constant 0 : index
    %c0_14 = arith.constant 0 : index
    %c0_15 = arith.constant 0 : index
    %c0_16 = arith.constant 0 : index
    %27 = vector.load %arg11[%c0_13, %c0_14, %c0_15, %c0_16] : memref<4x1x8x8xf32, #tpu.memory_space<vmem>>, vector<1x1x8x8xf32>
    %28 = vector.shape_cast %27 : vector<1x1x8x8xf32> to vector<8x8xf32>
    %29 = vector.shape_cast %26 : vector<8x8xf32> to vector<1x1x8x8xf32>
    tpu.vector_store %arg11[%c0_13, %c0_14, %c0_15, %c0_16], %29 {strides = array<i32>} : memref<4x1x8x8xf32, #tpu.memory_space<vmem>>, vector<1x1x8x8xf32>,
    %cst_17 = arith.constant dense<0.000000e+00> : vector<8x16xf32>
    %30 = tpu.matmul %26, %11, %cst_17 {dimension_numbers = #tpu.dot_dimension_numbers<[1], [0], [0], [1], [0, 0, 1, 1], [], []>} : vector<8x8xf32>, vector<8x16xf32>, vector<8x16xf32> -> vector<8x16xf32>
    %c0_18 = arith.constant 0 : index
    %c0_19 = arith.constant 0 : index
    %31 = vector.load %arg14[%c0_18, %c0_19] : memref<8x64xf32, #tpu.memory_space<vmem>>, vector<8x16xf32>
    tpu.vector_store %arg14[%c0_18, %c0_19], %30 {strides = array<i32>} : memref<8x64xf32, #tpu.memory_space<vmem>>, vector<8x16xf32>,
    %32 = vector.extract_strided_slice %6 {offsets = [0, 16], sizes = [8, 16], strides = [1, 1]} : vector<8x64xf32> to vector<8x16xf32>
    %33 = vector.extract_strided_slice %7 {offsets = [0, 16], sizes = [8, 16], strides = [1, 1]} : vector<8x64xf32> to vector<8x16xf32>
    %34 = vector.extract_strided_slice %8 {offsets = [0, 16], sizes = [8, 16], strides = [1, 1]} : vector<8x64xf32> to vector<8x16xf32>
    %cst_20 = arith.constant dense<0.000000e+00> : vector<8x8xf32>
    %35 = tpu.matmul %32, %33, %cst_20 {dimension_numbers = #tpu.dot_dimension_numbers<[1], [1], [0], [0], [0, 0, 1, 0], [], []>} : vector<8x16xf32>, vector<8x16xf32>, vector<8x8xf32> -> vector<8x8xf32>
    %cst_21 = arith.constant dense<0xFF800000> : vector<8xf32>
    %36 = vector.multi_reduction <maximumf>, %35, %cst_21 [1] : vector<8x8xf32> to vector<8xf32>
    %37 = vector.shape_cast %36 : vector<8xf32> to vector<8x1xf32>
    %38 = vector.broadcast %37 : vector<8x1xf32> to vector<8x8xf32>
    %39 = arith.subf %35, %38 : vector<8x8xf32>
    %40 = math.exp %39 : vector<8x8xf32>
    %cst_22 = arith.constant dense<0.000000e+00> : vector<8xf32>
    %41 = vector.multi_reduction <add>, %40, %cst_22 [1] : vector<8x8xf32> to vector<8xf32>
    %42 = vector.shape_cast %41 : vector<8xf32> to vector<8x1xf32>
    %43 = tpu.reciprocal %42 {approx = true} : vector<8x1xf32> -> vector<8x1xf32>
    %44 = arith.mulf %42, %43 : vector<8x1xf32>
    %cst_23 = arith.constant 2.000000e+00 : f32
    %45 = vector.broadcast %cst_23 : f32 to vector<8x1xf32>
    %46 = arith.subf %45, %44 : vector<8x1xf32>
    %47 = arith.mulf %43, %46 : vector<8x1xf32>
    %48 = vector.broadcast %47 : vector<8x1xf32> to vector<8x8xf32>
    %49 = arith.mulf %40, %48 : vector<8x8xf32>
    %c1 = arith.constant 1 : index
    %c0_24 = arith.constant 0 : index
    %c0_25 = arith.constant 0 : index
    %c0_26 = arith.constant 0 : index
    %50 = vector.load %arg11[%c1, %c0_24, %c0_25, %c0_26] : memref<4x1x8x8xf32, #tpu.memory_space<vmem>>, vector<1x1x8x8xf32>
    %51 = vector.shape_cast %50 : vector<1x1x8x8xf32> to vector<8x8xf32>
    %52 = vector.shape_cast %49 : vector<8x8xf32> to vector<1x1x8x8xf32>
    tpu.vector_store %arg11[%c1, %c0_24, %c0_25, %c0_26], %52 {strides = array<i32>} : memref<4x1x8x8xf32, #tpu.memory_space<vmem>>, vector<1x1x8x8xf32>,
    %cst_27 = arith.constant dense<0.000000e+00> : vector<8x16xf32>
    %53 = tpu.matmul %49, %34, %cst_27 {dimension_numbers = #tpu.dot_dimension_numbers<[1], [0], [0], [1], [0, 0, 1, 1], [], []>} : vector<8x8xf32>, vector<8x16xf32>, vector<8x16xf32> -> vector<8x16xf32>
    %c0_28 = arith.constant 0 : index
    %c16 = arith.constant 16 : index
    %54 = vector.load %arg14[%c0_28, %c16] : memref<8x64xf32, #tpu.memory_space<vmem>>, vector<8x16xf32>
    tpu.vector_store %arg14[%c0_28, %c16], %53 {strides = array<i32>} : memref<8x64xf32, #tpu.memory_space<vmem>>, vector<8x16xf32>,
    %55 = vector.extract_strided_slice %6 {offsets = [0, 32], sizes = [8, 16], strides = [1, 1]} : vector<8x64xf32> to vector<8x16xf32>
    %56 = vector.extract_strided_slice %7 {offsets = [0, 32], sizes = [8, 16], strides = [1, 1]} : vector<8x64xf32> to vector<8x16xf32>
    %57 = vector.extract_strided_slice %8 {offsets = [0, 32], sizes = [8, 16], strides = [1, 1]} : vector<8x64xf32> to vector<8x16xf32>
    %cst_29 = arith.constant dense<0.000000e+00> : vector<8x8xf32>
    %58 = tpu.matmul %55, %56, %cst_29 {dimension_numbers = #tpu.dot_dimension_numbers<[1], [1], [0], [0], [0, 0, 1, 0], [], []>} : vector<8x16xf32>, vector<8x16xf32>, vector<8x8xf32> -> vector<8x8xf32>
    %cst_30 = arith.constant dense<0xFF800000> : vector<8xf32>
    %59 = vector.multi_reduction <maximumf>, %58, %cst_30 [1] : vector<8x8xf32> to vector<8xf32>
    %60 = vector.shape_cast %59 : vector<8xf32> to vector<8x1xf32>
    %61 = vector.broadcast %60 : vector<8x1xf32> to vector<8x8xf32>
    %62 = arith.subf %58, %61 : vector<8x8xf32>
    %63 = math.exp %62 : vector<8x8xf32>
    %cst_31 = arith.constant dense<0.000000e+00> : vector<8xf32>
    %64 = vector.multi_reduction <add>, %63, %cst_31 [1] : vector<8x8xf32> to vector<8xf32>
    %65 = vector.shape_cast %64 : vector<8xf32> to vector<8x1xf32>
    %66 = tpu.reciprocal %65 {approx = true} : vector<8x1xf32> -> vector<8x1xf32>
    %67 = arith.mulf %65, %66 : vector<8x1xf32>
    %cst_32 = arith.constant 2.000000e+00 : f32
    %68 = vector.broadcast %cst_32 : f32 to vector<8x1xf32>
    %69 = arith.subf %68, %67 : vector<8x1xf32>
    %70 = arith.mulf %66, %69 : vector<8x1xf32>
    %71 = vector.broadcast %70 : vector<8x1xf32> to vector<8x8xf32>
    %72 = arith.mulf %63, %71 : vector<8x8xf32>
    %c2 = arith.constant 2 : index
    %c0_33 = arith.constant 0 : index
    %c0_34 = arith.constant 0 : index
    %c0_35 = arith.constant 0 : index
    %73 = vector.load %arg11[%c2, %c0_33, %c0_34, %c0_35] : memref<4x1x8x8xf32, #tpu.memory_space<vmem>>, vector<1x1x8x8xf32>
    %74 = vector.shape_cast %73 : vector<1x1x8x8xf32> to vector<8x8xf32>
    %75 = vector.shape_cast %72 : vector<8x8xf32> to vector<1x1x8x8xf32>
    tpu.vector_store %arg11[%c2, %c0_33, %c0_34, %c0_35], %75 {strides = array<i32>} : memref<4x1x8x8xf32, #tpu.memory_space<vmem>>, vector<1x1x8x8xf32>,
    %cst_36 = arith.constant dense<0.000000e+00> : vector<8x16xf32>
    %76 = tpu.matmul %72, %57, %cst_36 {dimension_numbers = #tpu.dot_dimension_numbers<[1], [0], [0], [1], [0, 0, 1, 1], [], []>} : vector<8x8xf32>, vector<8x16xf32>, vector<8x16xf32> -> vector<8x16xf32>
    %c0_37 = arith.constant 0 : index
    %c32 = arith.constant 32 : index
    %77 = vector.load %arg14[%c0_37, %c32] : memref<8x64xf32, #tpu.memory_space<vmem>>, vector<8x16xf32>
    tpu.vector_store %arg14[%c0_37, %c32], %76 {strides = array<i32>} : memref<8x64xf32, #tpu.memory_space<vmem>>, vector<8x16xf32>,
    %78 = vector.extract_strided_slice %6 {offsets = [0, 48], sizes = [8, 16], strides = [1, 1]} : vector<8x64xf32> to vector<8x16xf32>
    %79 = vector.extract_strided_slice %7 {offsets = [0, 48], sizes = [8, 16], strides = [1, 1]} : vector<8x64xf32> to vector<8x16xf32>
    %80 = vector.extract_strided_slice %8 {offsets = [0, 48], sizes = [8, 16], strides = [1, 1]} : vector<8x64xf32> to vector<8x16xf32>
    %cst_38 = arith.constant dense<0.000000e+00> : vector<8x8xf32>
    %81 = tpu.matmul %78, %79, %cst_38 {dimension_numbers = #tpu.dot_dimension_numbers<[1], [1], [0], [0], [0, 0, 1, 0], [], []>} : vector<8x16xf32>, vector<8x16xf32>, vector<8x8xf32> -> vector<8x8xf32>
    %cst_39 = arith.constant dense<0xFF800000> : vector<8xf32>
    %82 = vector.multi_reduction <maximumf>, %81, %cst_39 [1] : vector<8x8xf32> to vector<8xf32>
    %83 = vector.shape_cast %82 : vector<8xf32> to vector<8x1xf32>
    %84 = vector.broadcast %83 : vector<8x1xf32> to vector<8x8xf32>
    %85 = arith.subf %81, %84 : vector<8x8xf32>
    %86 = math.exp %85 : vector<8x8xf32>
    %cst_40 = arith.constant dense<0.000000e+00> : vector<8xf32>
    %87 = vector.multi_reduction <add>, %86, %cst_40 [1] : vector<8x8xf32> to vector<8xf32>
    %88 = vector.shape_cast %87 : vector<8xf32> to vector<8x1xf32>
    %89 = tpu.reciprocal %88 {approx = true} : vector<8x1xf32> -> vector<8x1xf32>
    %90 = arith.mulf %88, %89 : vector<8x1xf32>
    %cst_41 = arith.constant 2.000000e+00 : f32
    %91 = vector.broadcast %cst_41 : f32 to vector<8x1xf32>
    %92 = arith.subf %91, %90 : vector<8x1xf32>
    %93 = arith.mulf %89, %92 : vector<8x1xf32>
    %94 = vector.broadcast %93 : vector<8x1xf32> to vector<8x8xf32>
    %95 = arith.mulf %86, %94 : vector<8x8xf32>
    %c3 = arith.constant 3 : index
    %c0_42 = arith.constant 0 : index
    %c0_43 = arith.constant 0 : index
    %c0_44 = arith.constant 0 : index
    %96 = vector.load %arg11[%c3, %c0_42, %c0_43, %c0_44] : memref<4x1x8x8xf32, #tpu.memory_space<vmem>>, vector<1x1x8x8xf32>
    %97 = vector.shape_cast %96 : vector<1x1x8x8xf32> to vector<8x8xf32>
    %98 = vector.shape_cast %95 : vector<8x8xf32> to vector<1x1x8x8xf32>
    tpu.vector_store %arg11[%c3, %c0_42, %c0_43, %c0_44], %98 {strides = array<i32>} : memref<4x1x8x8xf32, #tpu.memory_space<vmem>>, vector<1x1x8x8xf32>,
    %cst_45 = arith.constant dense<0.000000e+00> : vector<8x16xf32>
    %99 = tpu.matmul %95, %80, %cst_45 {dimension_numbers = #tpu.dot_dimension_numbers<[1], [0], [0], [1], [0, 0, 1, 1], [], []>} : vector<8x8xf32>, vector<8x16xf32>, vector<8x16xf32> -> vector<8x16xf32>
    %c0_46 = arith.constant 0 : index
    %c48 = arith.constant 48 : index
    %100 = vector.load %arg14[%c0_46, %c48] : memref<8x64xf32, #tpu.memory_space<vmem>>, vector<8x16xf32>
    tpu.vector_store %arg14[%c0_46, %c48], %99 {strides = array<i32>} : memref<8x64xf32, #tpu.memory_space<vmem>>, vector<8x16xf32>,
    %c0_47 = arith.constant 0 : index
    %c0_48 = arith.constant 0 : index
    %101 = vector.load %arg14[%c0_47, %c0_48] : memref<8x64xf32, #tpu.memory_space<vmem>>, vector<8x64xf32>
    %c0_49 = arith.constant 0 : index
    %c0_50 = arith.constant 0 : index
    %102 = vector.load %arg8[%c0_49, %c0_50] : memref<64x32xf32, #tpu.memory_space<vmem>>, vector<64x32xf32>
    %cst_51 = arith.constant dense<0.000000e+00> : vector<8x32xf32>
    %103 = tpu.matmul %101, %102, %cst_51 {dimension_numbers = #tpu.dot_dimension_numbers<[1], [0], [0], [1], [0, 0, 1, 1], [], []>} : vector<8x64xf32>, vector<64x32xf32>, vector<8x32xf32> -> vector<8x32xf32>
    %c0_52 = arith.constant 0 : index
    %c0_53 = arith.constant 0 : index
    %104 = vector.load %arg9[%c0_52, %c0_53] : memref<1x32xf32, #tpu.memory_space<vmem>>, vector<1x32xf32>
    %105 = vector.broadcast %104 : vector<1x32xf32> to vector<8x32xf32>
    %106 = arith.addf %103, %105 : vector<8x32xf32>
    %c0_54 = arith.constant 0 : index
    %c0_55 = arith.constant 0 : index
    %c0_56 = arith.constant 0 : index
    %107 = vector.load %arg10[%c0_54, %c0_55, %c0_56] : memref<1x8x32xf32, #tpu.memory_space<vmem>>, vector<1x8x32xf32>
    %108 = vector.shape_cast %107 : vector<1x8x32xf32> to vector<8x32xf32>
    %109 = vector.shape_cast %106 : vector<8x32xf32> to vector<1x8x32xf32>
    tpu.vector_store %arg10[%c0_54, %c0_55, %c0_56], %109 {strides = array<i32>} : memref<1x8x32xf32, #tpu.memory_space<vmem>>, vector<1x8x32xf32>,
    return
  }
  func.func @transform_0(%arg0: i32, %arg1: i32) -> (i32, i32, i32) {
    %c0_i32 = arith.constant 0 : i32
    %c0_i32_0 = arith.constant 0 : i32
    return %arg0, %arg1, %c0_i32 : i32, i32, i32
  }
  func.func @transform_1(%arg0: i32, %arg1: i32) -> (i32, i32, i32) {
    %c0_i32 = arith.constant 0 : i32
    %c0_i32_0 = arith.constant 0 : i32
    %c0_i32_1 = arith.constant 0 : i32
    return %arg0, %c0_i32, %c0_i32_0 : i32, i32, i32
  }
  func.func @transform_2(%arg0: i32, %arg1: i32) -> (i32, i32, i32) {
    %c0_i32 = arith.constant 0 : i32
    %c0_i32_0 = arith.constant 0 : i32
    %c0_i32_1 = arith.constant 0 : i32
    return %arg0, %c0_i32, %c0_i32_0 : i32, i32, i32
  }
  func.func @transform_3(%arg0: i32, %arg1: i32) -> (i32, i32) {
    %c0_i32 = arith.constant 0 : i32
    %c0_i32_0 = arith.constant 0 : i32
    %c0_i32_1 = arith.constant 0 : i32
    return %c0_i32, %c0_i32_0 : i32, i32
  }
  func.func @transform_4(%arg0: i32, %arg1: i32) -> (i32, i32) {
    %c0_i32 = arith.constant 0 : i32
    %c0_i32_0 = arith.constant 0 : i32
    %c0_i32_1 = arith.constant 0 : i32
    return %c0_i32, %c0_i32_0 : i32, i32
  }
  func.func @transform_5(%arg0: i32, %arg1: i32) -> (i32, i32) {
    %c0_i32 = arith.constant 0 : i32
    %c0_i32_0 = arith.constant 0 : i32
    %c0_i32_1 = arith.constant 0 : i32
    return %c0_i32, %c0_i32_0 : i32, i32
  }
  func.func @transform_6(%arg0: i32, %arg1: i32) -> (i32, i32) {
    %c0_i32 = arith.constant 0 : i32
    %c0_i32_0 = arith.constant 0 : i32
    %c0_i32_1 = arith.constant 0 : i32
    return %c0_i32, %c0_i32_0 : i32, i32
  }
  func.func @transform_7(%arg0: i32, %arg1: i32) -> (i32, i32) {
    %c0_i32 = arith.constant 0 : i32
    %c0_i32_0 = arith.constant 0 : i32
    %c0_i32_1 = arith.constant 0 : i32
    return %c0_i32, %c0_i32_0 : i32, i32
  }
  func.func @transform_8(%arg0: i32, %arg1: i32) -> (i32, i32, i32) {
    %c0_i32 = arith.constant 0 : i32
    %c0_i32_0 = arith.constant 0 : i32
    return %arg0, %arg1, %c0_i32 : i32, i32, i32
  }
  func.func @transform_9(%arg0: i32, %arg1: i32) -> (i32, i32, i32, i32) {
    %c0_i32 = arith.constant 0 : i32
    %c0_i32_0 = arith.constant 0 : i32
    %c0_i32_1 = arith.constant 0 : i32
    return %c0_i32, %arg0, %arg1, %c0_i32_0 : i32, i32, i32, i32
  }
}

</mosaic_0001>

<bundles_post_ra>
// kernel: tpu_custom_call.1
= control target key start
LH: loop header
LB: loop body
LE: loop exit
PB: predicated region body
PF: predicated region fallthrough
CT: control target
= control target key end

     0   :  { %s2720_s0 = inlined_call_operand.hbm [shape: f32[2,8,32], index: 0, kind: input, shape index: {}]   ;;  %s2721_s1 = inlined_call_operand.hbm [shape: f32[2,8,32], index: 1, kind: input, shape index: {}]   ;;  %s2722_s2 = inlined_call_operand.hbm [shape: f32[2,8,32], index: 2, kind: input, shape index: {}]   ;;  %s2723_s3 = inlined_call_operand.vmem [shape: f32[32,64], index: 3, kind: input, shape index: {}]   ;;  %s2724_s4 = inlined_call_operand.vmem [shape: f32[32,64], index: 4, kind: input, shape index: {}]   ;;  %s2725_s5 = inlined_call_operand.vmem [shape: f32[32,64], index: 5, kind: input, shape index: {}]   ;;  %s2726_s6 = inlined_call_operand.vmem [shape: f32[64,32], index: 6, kind: input, shape index: {}]   ;;  %s2727_s7 = inlined_call_operand.vmem [shape: f32[1,32], index: 7, kind: input, shape index: {}]   ;;  %s2728_s8 = inlined_call_operand.hbm [shape: f32[2,8,32], index: 8, kind: output, shape index: {0}]   ;;  %s2729_s9 = inlined_call_operand.hbm [shape: f32[4,2,8,8], index: 9, kind: output, shape index: {1}]  }
   0x1   :  { %2742 = sst [smem:[#allocation24_spill]] %s2721_s1 }
   0x2   :  { %2743 = sst [smem:[#allocation25_spill]] %s2727_s7 }
   0x3   :  { %2744 = sst [smem:[#allocation26_spill]] %s2728_s8 }
   0x4   :  { %2745 = sst [smem:[#allocation27_spill]] %s2729_s9 }
   0x5   :  { %15 = vsyncpa [#allocation6], 0 }
   0x6   :  { %17 = vsyncpa [#allocation6 + $0x1], 0 }
   0x7   :  { %18 = vsyncpa [#allocation9], 0 }
   0x8   :  { %20 = vsyncpa [#allocation9 + $0x1], 0 }
   0x9   :  { %21 = vsyncpa [#allocation7], 0 }
   0xa   :  { %23 = vsyncpa [#allocation7 + $0x1], 0 }
   0xb   :  { %24 = vsyncpa [#allocation13], 0 }
   0xc   :  { %26 = vsyncpa [#allocation13 + $0x1], 0  ;;  %s2259_s30 = smov 0   ;;  %s2261_s10 = smov 0  }
   0xd   :  { %s2263_s11 = smov 0   ;;  %s2265_s12 = smov 0  }
   0xe   :  { %s2267_s13 = smov 0   ;;  %s2269_s14 = smov 0  }
   0xf LB: > { %2746 = sst [smem:[#allocation18_spill]] %s2170_s30  ;;  %s2290_s15 = sadd.s32 4294967295, %s2190_s14   ;;  %s2190_s14 = sphi %s2269_s14, %s32_s14   ;;  %s2186_s13 = sphi %s2267_s13, %s2777_s13   ;;  %s2182_s12 = sphi %s2265_s12, %s2776_s12   ;;  %s2178_s11 = sphi %s2263_s11, %s2780_s11   ;;  %s2174_s10 = sphi %s2261_s10, %s2779_s10   ;;  %s2170_s30 = sphi %s2259_s30, %s2778_s30  }
  0x10   : > { %2747 = sst [smem:[#allocation19_spill]] %s2186_s13  ;;  %s1674_s16 = sadd.s32 4294967294, %s2190_s14  }
  0x11   : > { %2748 = sst [smem:[#allocation20_spill]] %s2190_s14  ;;  %s44_s17 = sadd.s32 1, %s2186_s13 }
  0x12   : > { %s53_s18 = sadd.s32 1, %s2178_s11  ;;  %p46_p0 = scmp.ge.s32.totalorder %s44_s17, 2 }
  0x13   : > { %p60_p1 = scmp.ne.s32.totalorder %s2178_s11, %s2174_s10  ;;  %p61_p2 = scmp.eq.s32.totalorder %s2190_s14, 0 }
  0x14   : > { %p66_p3 = scmp.ne.s32.totalorder %s2174_s10, %s2170_s30  ;;  %s2782_s17 = smov (%p46_p0, %s44_s17), 0 }
  0x15   : > { %2749 = sst [smem:[#allocation21_spill]] %s2782_s17  ;;  %p2302_p4 = por %p61_p2, %p60_p1 }
  0x16   : > { %p67_p5 = scmp.eq.s32.totalorder %s2290_s15, 0  ;;  %s48_s20 = ssub.s32 %s2186_s13, %s2782_s17 }
  0x17   : > { %p249_p6 = scmp.eq.s32.totalorder %s2290_s15, 1  ;;  %p51_p7 = scmp.eq.s32.totalorder %s48_s20, 0 }
  0x18   : > { %p2310_p8 = por %p67_p5, %p66_p3  ;;  %p255_p10 = scmp.eq.s32.totalorder %s1674_s16, 1 }
  0x19   : > { %p2314_p9 = por %p249_p6, %p60_p1  ;;  %p1904_p13 = scmp.lt.s32.totalorder %s2190_s14, 2 }
  0x1a   : > { %s2751_s21 = scalar_select %p2310_p8, 1, 0 }
  0x1b   : > { %s2752_s22 = scalar_select %p2314_p9, 1, 0 }
  0x1c   : > { %s2319_s23 = scalar_select %p51_p7, %s2178_s11, %s53_s18  }
  0x1d   : > { %p2321_p11 = por %p255_p10, %p66_p3  ;;  %s2730_s25 = sand.u32 1, %s2178_s11  }
  0x1e   : > { %2753 = sst [smem:[#allocation22_spill]] %s2319_s23  ;;  %s2330_s26 = sshll.u32 %s2730_s25, 3 }
  0x1f   : > { %s2754_s24 = scalar_select %p2321_p11, 1, 0 }
  0x20   : > { %s2333_s27 = sshll.u32 %s2186_s13, 7  ;;  %p2337_p0 = pnand %p1904_p13, %p2302_p4 }
  0x21   : > { %2755 = sst [smem:[#allocation23_spill]] %s2754_s24  ;;  %s337_s29 = sand.u32 1, %s2190_s14  }
  0x22   : > { %s2756_s28 = scalar_select %p2337_p0, 1, 0 }
  0x23   : > { %s2757_s1 = sld [smem:[#allocation24_spill]]  ;;  %s341_s25 = scalar_lea.vmem [#allocation8], %s2330_s26 }
  0x24   : > { %s348_s17 = sshll.u32 %s341_s25, 4  ;;  %s2353_s19 = scalar_lea.sflag [#allocation9], %s337_s29  ;;  %s2350_s17 = int_to_ptr.vmem [resolvable:$true] %s348_s17 }
  0x25   : > { %p2359_p4 = pneg %p2337_p0 }
  0x29   : > { %s2346_s20 = scalar_lea.hbm %s2757_s1, %s2333_s27  ;;  %s1987_s25 = scalar_lea.hbm %s2757_s1, 256 }
  0x2a   : > { %s1982_s13 = scalar_lea.hbm %s2346_s20, 128  ;;  %p1988_p7 = scmp.lt.u32.totalorder %s2346_s20, %s2757_s1 }
  0x2b   : > { %p1983_p3 = scmp.ne.s32.totalorder %s2346_s20, %s1982_s13  ;;  %p1989_p10 = scmp.lt.u32.totalorder %s1987_s25, %s1982_s13 }
  0x2c   : > { %p1991_p12 = scmp.lt.u32.totalorder %s1982_s13, %s2346_s20 }
  0x2d   : > { %p1985_p5 = pnand %p2359_p4, %p1983_p3  ;;  %p1990_p13 = por %p1989_p10, %p1988_p7 }
  0x2f   : > { %p1986_p6 = pneg %p1985_p5  ;;  %p1992_p1 = por %p1991_p12, %p1990_p13 }
  0x31   : > { %p1993_p2 = pnand %p1992_p1, %p1986_p6 }
  0x33   : > { %1996 = shalt.err (!%p1993_p2)
}
  0x34   : > { %s1997_s29 = scalar_lea.vmem %s2350_s17, 128  ;;  %s2192_s16 = smov [#allocation8]  }
  0x35   : > { %p1998_p3 = scmp.ne.s32.totalorder %s2350_s17, %s1997_s29  ;;  %s2002_s18 = sshll.u32 %s2192_s16, 4  ;;  %s2003_s18 = int_to_ptr.vmem [resolvable:$false] %s2002_s18 }
  0x36   : > { %s2004_s30 = scalar_lea.vmem %s2003_s18, 256  ;;  %p2005_p9 = scmp.lt.s32.totalorder %s2350_s17, %s2003_s18 }
  0x37   : > { %p2000_p5 = pnand %p1998_p3, %p2359_p4  ;;  %p2006_p8 = scmp.lt.s32.totalorder %s2004_s30, %s1997_s29 }
  0x39   : > { %p2001_p11 = pneg %p2000_p5  ;;  %p2007_p7 = por %p2006_p8, %p2005_p9 }
  0x3b   : > { %p2008_p10 = pnand %p2007_p7, %p2001_p11 }
  0x3d   : > { %2011 = shalt.err (!%p2008_p10)
}
  0x3e   : > { %1893 = dma.hbm_to_vmem [thread:$0]  (!%p2337_p0), %s2346_s20, 128, %s2350_s17, %s2353_s19  }
  0x3f   : > { %p2759_p12 = scmp.lt.s32.totalorder %s2190_s14, 3  ;;  %p2760_p1 = scmp.ge.s32.totalorder %s2190_s14, 1 }
  0x40   : > { %s2395_s29 = scalar_lea.hbm %s2720_s0, %s2333_s27  ;;  %s322_s16 = scalar_lea.vmem [#allocation5], %s2330_s26 }
  0x41   : > { %p2387_p2 = pnand %p2760_p1, %p2759_p12  ;;  %s330_s18 = sshll.u32 %s322_s16, 4  ;;  %s2398_s18 = int_to_ptr.vmem [resolvable:$true] %s330_s18 }
  0x42   : > { %s2404_s30 = scalar_lea.hbm %s2722_s2, %s2333_s27  ;;  %s2762_s1 = sand.u32 1, %s2178_s11  }
  0x43   : > { %s2761_s13 = scalar_select %p2387_p2, 1, 0 }
  0x44   : > { %s319_s14 = scalar_lea.sflag [#allocation6], %s2762_s1  ;;  %s2012_s8 = scalar_lea.hbm %s2395_s29, 128 }
  0x45   : > { %p2013_p8 = scmp.ne.s32.totalorder %s2395_s29, %s2012_s8  ;;  %s2017_s7 = scalar_lea.hbm %s2720_s0, 256 }
  0x46   : > { %p2018_p6 = scmp.lt.u32.totalorder %s2395_s29, %s2720_s0  ;;  %p2019_p13 = scmp.lt.u32.totalorder %s2017_s7, %s2012_s8 }
  0x47   : > { %p2015_p9 = pnand %p2013_p8, %p2359_p4  ;;  %p2021_p5 = scmp.lt.u32.totalorder %s2012_s8, %s2395_s29 }
  0x48   : > { %p2020_p3 = por %p2019_p13, %p2018_p6 }
  0x49   : > { %p2016_p11 = pneg %p2015_p9 }
  0x4a   : > { %p2022_p7 = por %p2021_p5, %p2020_p3 }
  0x4c   : > { %p2023_p10 = pnand %p2022_p7, %p2016_p11 }
  0x4e   : > { %2026 = shalt.err (!%p2023_p10)
}
  0x4f   : > { %s2027_s1 = scalar_lea.vmem %s2398_s18, 128  ;;  %s2193_s27 = smov [#allocation5]  }
  0x50   : > { %p2028_p12 = scmp.ne.s32.totalorder %s2398_s18, %s2027_s1  ;;  %s2032_s17 = sshll.u32 %s2193_s27, 4  ;;  %s2033_s17 = int_to_ptr.vmem [resolvable:$false] %s2032_s17 }
  0x51   : > { %s2034_s9 = scalar_lea.vmem %s2033_s17, 256  ;;  %p2035_p9 = scmp.lt.s32.totalorder %s2398_s18, %s2033_s17 }
  0x52   : > { %p2030_p1 = pnand %p2028_p12, %p2359_p4  ;;  %p2036_p2 = scmp.lt.s32.totalorder %s2034_s9, %s2027_s1 }
  0x54   : > { %p2031_p8 = pneg %p2030_p1  ;;  %p2037_p6 = por %p2036_p2, %p2035_p9 }
  0x56   : > { %p2038_p13 = pnand %p2037_p6, %p2031_p8 }
  0x58   : > { %2041 = shalt.err (!%p2038_p13)
}
  0x59   : > { %1890 = dma.hbm_to_vmem [thread:$0]  (!%p2337_p0), %s2395_s29, 128, %s2398_s18, %s319_s14  }
  0x5a   : > { %s359_s7 = scalar_lea.vmem [#allocation10], %s2330_s26  ;;  %s2042_s20 = scalar_lea.hbm %s2404_s30, 128 }
  0x5b   : > { %s366_s8 = sshll.u32 %s359_s7, 4  ;;  %p2043_p11 = scmp.ne.s32.totalorder %s2404_s30, %s2042_s20  ;;  %s367_s8 = int_to_ptr.vmem [resolvable:$true] %s366_s8 }
  0x5c   : > { %s2047_s16 = scalar_lea.hbm %s2722_s2, 256  ;;  %p2048_p5 = scmp.lt.u32.totalorder %s2404_s30, %s2722_s2 }
  0x5d   : > { %p2045_p2 = pnand %p2043_p11, %p2359_p4  ;;  %p2049_p7 = scmp.lt.u32.totalorder %s2047_s16, %s2042_s20 }
  0x5e   : > { %p2051_p12 = scmp.lt.u32.totalorder %s2042_s20, %s2404_s30 }
  0x5f   : > { %p2046_p3 = pneg %p2045_p2  ;;  %p2050_p10 = por %p2049_p7, %p2048_p5 }
  0x61   : > { %p2052_p1 = por %p2051_p12, %p2050_p10 }
  0x63   : > { %p2053_p8 = pnand %p2052_p1, %p2046_p3 }
  0x65   : > { %2056 = shalt.err (!%p2053_p8)
}
  0x66   : > { %s2057_s14 = scalar_lea.vmem %s367_s8, 128  ;;  %s2194_s26 = smov [#allocation10]  }
  0x67   : > { %p2058_p9 = scmp.ne.s32.totalorder %s367_s8, %s2057_s14  ;;  %s2062_s29 = sshll.u32 %s2194_s26, 4  ;;  %s2063_s29 = int_to_ptr.vmem [resolvable:$false] %s2062_s29 }
  0x68   : > { %s2064_s18 = scalar_lea.vmem %s2063_s29, 256  ;;  %p2065_p11 = scmp.lt.s32.totalorder %s367_s8, %s2063_s29 }
  0x69   : > { %p2060_p6 = pnand %p2058_p9, %p2359_p4  ;;  %p2066_p2 = scmp.lt.s32.totalorder %s2064_s18, %s2057_s14 }
  0x6b   : > { %p2061_p13 = pneg %p2060_p6  ;;  %p2067_p0 = por %p2066_p2, %p2065_p11 }
  0x6d   : > { %p2068_p5 = pnand %p2067_p0, %p2061_p13 }
  0x6f   : > { %2071 = shalt.err (!%p2068_p5)
}
  0x70   : > { %p2763_p7 = scmp.ne.s32.totalorder %s2756_s28, 0  ;;  %p2764_p3 = scmp.ne.s32.totalorder %s2761_s13, 0 }
  0x71   : > { %s2451_s23 = sand.u32 (!%p2764_p3), 1, %s2174_s10   ;;  %p2765_p0 = scmp.ne.s32.totalorder (!%p2764_p3), %s2751_s21, 0 }
  0x72   : > { %1896 = dma.hbm_to_vmem [thread:$0]  (!%p2763_p7), %s2404_s30, 128, %s367_s8, %s2353_s19  }
  0x73   : > { %375 = sbr.rel (%p2764_p3) target bundleno = 1579 (0x62b), region = 52  ;;  %s2454_s17 = sshll.u32 (!%p2764_p3), %s2451_s23, 3 }
  0x74   : > { %s378_s9 = scalar_lea.sflag (!%p2764_p3), [#allocation6], %s2451_s23  ;;  %s381_s7 = scalar_lea.vmem (!%p2764_p3), [#allocation5], %s2454_s17 }
  0x7a   : > { %2153 = dma.done.wait (%p2765_p0), %s378_s9, 128  }
  0x7b   : > { %2155 = vsyncadd (%p2765_p0), %s378_s9, 4294967168  ;;  %s386_s28 = sand.u32 1, %s2290_s15   ;;  %s390_s13 = scalar_lea.vmem [#allocation8], %s2454_s17 }
  0x7c   : > { %s387_s19 = scalar_lea.sflag [#allocation9], %s386_s28 }
  0x7d   : > { %2157 = dma.done.wait (%p2765_p0), %s387_s19, 256  }
  0x7e   : > { %2159 = vsyncadd (%p2765_p0), %s387_s19, 4294967040  ;;  %v2195_v0 = vmov 0.0|0.0   ;;  %vm2196_vm0 = vmmov 0   ;;  %v2197_v1 = vmov 0.0   ;;  %v455_v2 = vld [vmem:[%s2724_s4] sm:$0xff]  ;;  %v456_v3 = vld [vmem:[%s2724_s4 + $0x8] sm:$0xff] }
  0x7f   : > { %1847 = vmatprep.subr.bf16.mxu1 %v2195_v0  ;;  %1763 = vmatprep.mubr.msk.f32.mxu1 %vm2196_vm0, %v2197_v1  ;;  %v457_v4 = vld [vmem:[%s2724_s4 + $0x10] sm:$0xff]  ;;  %v1848_v5 = vpack.c.bf16 %v456_v3, %v455_v2  ;;  %v458_v6 = vld [vmem:[%s2724_s4 + $0x18] sm:$0xff]  ;;  %v614_v7 = vld [vmem:[%s2723_s3] sm:$0xff]  ;;  %vm459_vm1 = vcmask 261120   ;;  %s399_s24 = scalar_lea.vmem [#allocation10], %s2454_s17  ;;  %vm533_vm2 = vcmask 523264  }
  0x80   : > { %1859 = vmatprep.subr.bf16.mxu0 %v2195_v0  ;;  %1785 = vmatprep.mubr.msk.f32.mxu0 %vm2196_vm0, %v2197_v1  ;;  %v615_v8 = vld [vmem:[%s2723_s3 + $0x8] sm:$0xff]  ;;  %v616_v9 = vld [vmem:[%s2723_s3 + $0x10] sm:$0xff]  ;;  %v617_v10 = vld [vmem:[%s2723_s3 + $0x18] sm:$0xff]  ;;  %v1851_v11 = vpack.c.bf16 %v458_v6, %v457_v4  ;;  %vm694_vm3 = vcmask 130048   ;;  %s2198_s25 = smov 96   ;;  %s2199_s16 = smov 112  }
  0x81   : > { %1849 = vmatpush3.bf16.msra.mxu1 %v1848_v5  ;;  %v1860_v12 = vpack.c.bf16 %v615_v8, %v614_v7  ;;  %v535_v13 = vld [vmem:[%s2725_s5] sm:$0xff]  ;;  %v536_v14 = vld [vmem:[%s2725_s5 + $0x8] sm:$0xff]  ;;  %v1863_v15 = vpack.c.bf16 %v617_v10, %v616_v9  ;;  %v537_v19 = vld [vmem:[%s2725_s5 + $0x10] sm:$0xff]  ;;  %s2200_s1 = smov 80   ;;  %vm771_vm4 = vcmask 64512   ;;  %s1688_s27 = sshll.u32 %s2451_s23, 5 }
  0x82   : > { %1850 = vmatprep.subr.bf16.mxu1 %v2195_v0  ;;  %v453_v16 = vld [vmem:[%s390_s13] sm:$0xff]  ;;  %v1854_v17 = vpack.c.bf16 %v536_v14, %v535_v13  ;;  %v613_v18 = vld [vmem:[%s381_s7] sm:$0xff]  ;;  %s2575_s14 = scalar_lea.vmem [#allocation12], %s1688_s27  ;;  %s2202_s27 = smov 32   ;;  %vm1036_vm5 = vcmask 261248   ;;  %vm1212_vm6 = vcmask 392448  }
  0x83   : > { %1861 = vmatpush3.bf16.msra.mxu0 %v1860_v12  ;;  %v538_v20 = vld [vmem:[%s2725_s5 + $0x18] sm:$0xff]  ;;  %s2203_s26 = smov 48   ;;  %vm1388_vm7 = vcmask 523648   ;;  %s1514_s29 = sshll.u32 %s2575_s14, 4  ;;  %s2628_s29 = int_to_ptr.vmem [resolvable:$true] %s1514_s29 }
  0x84   : > { %1862 = vmatprep.subr.bf16.mxu0 %v2195_v0  ;;  %v1857_v21 = vpack.c.bf16 %v538_v20, %v537_v19  ;;  %v454_v22 = vld [vmem:[%s399_s24] sm:$0xff]  ;;  %s1711_s18 = sshll.u32 %s2182_s12, 7  ;;  %s2766_s19 = sld [smem:[#allocation27_spill]] }
  0x85   : > { %1852 = vmatpush3.bf16.msra.mxu1 %v1851_v11  ;;  %s1487_s30 = scalar_lea.sflag [#allocation13], %s2451_s23  ;;  %s2072_s8 = scalar_lea.vmem %s2628_s29, 512 }
  0x86   : > { %1853 = vmatprep.subr.bf16.mxu1 %v2195_v0  ;;  %p2073_p4 = scmp.ne.s32.totalorder %s2628_s29, %s2072_s8  ;;  %p2767_p10 = scmp.ne.s32.totalorder %s2752_s22, 0 }
  0x87   : > { %1864 = vmatpush3.bf16.msra.mxu0 %v1863_v15  ;;  %s2204_s13 = smov [#allocation12]  }
  0x88   : > { %1764 = vmatmul.mubr.msk.f32.vlgmr.msra.gmra.mrb[0].mxu1 %vm459_vm1, %v453_v16  ;;  %1798 = vmatprep.subr.mxu0 %v2197_v1  ;;  %p2074_p12 = pnand %p2073_p4, %p2767_p10 }
  0x89   : > { %1855 = vmatpush3.bf16.msra.mxu1 %v1854_v17  ;;  %1774 = vmatprep.mubr.msk.f32.mxu1 %vm2196_vm0, %v2197_v1 }
  0x8a   : > { %1786 = vmatmul.mubr.msk.f32.vlgmr.msra.gmra.mrb[0].mxu0 %vm459_vm1, %v613_v18  ;;  %1856 = vmatprep.subr.bf16.mxu1 %v2195_v0  ;;  %s2635_s15 = scalar_lea.hbm %s2766_s19, %s1711_s18  ;;  %p2075_p1 = pneg %p2074_p12 }
  0x8b   : > { %1800 = vmatprep.mubr.msk.f32.mxu0 %vm2196_vm0, %v2197_v1 }
  0x8d   : > { %1858 = vmatpush3.bf16.msra.mxu1 %v1857_v21 }
  0x8e   : > { %1788 = vmatprep.subr.mxu1 %v2197_v1 }
  0x90   : > { %1775 = vmatmul.mubr.msk.f32.vlgmr.msra.gmra.mrb[2].mxu1 %vm459_vm1, %v454_v22 }
  0x91   : > { %1790 = vmatprep.mubr.msk.f32.mxu1 %vm2196_vm0, %v2197_v1 }
 0x15b   : > { %v529_v23 = vpop.f32.mrb[0].mxu1 }
 0x15c   : > { %534 = vst.msk [vmem:[#allocation2] sm:$0xff] %vm533_vm2, %v529_v23  ;;  %v1765_v24 = vpop.f32.mrb[1].mxu1 }
 0x15d   : > { %v688_v25 = vpop.f32.mrb[0].mxu0 }
 0x15e   : > { %v1787_v26 = vpop.f32.mrb[1].mxu0 }
 0x163   : > { %v692_v27 = vld [vmem:[#allocation2] sm:$0xff]  ;;  %v608_v28 = vpop.f32.mrb[2].mxu1 }
 0x164   : > { %1040 = vrot.lane.b32.xlu1 %v692_v27, %s2198_s25  ;;  %863 = vrot.lane.b32.xlu0 %v692_v27, %s2199_s16  ;;  %612 = vst.msk [vmem:[#allocation3] sm:$0xff] %vm533_vm2, %v608_v28  ;;  %v1776_v29 = vpop.f32.mrb[3].mxu1 }
 0x165   : > { %1789 = vmatpush3.xpose.msk.msra.mxu1 %vm694_vm3, %v692_v27 }
 0x166   : > { %1793 = vmatprep.subr.mxu1 %v2197_v1 }
 0x168   : > { %1791 = vmatmul.mubr.msk.f32.vlgmr.msra.gmra.mrb[4].mxu1 %vm694_vm3, %v688_v25  ;;  %1038 = vrot.lane.b32.xlu1 %v688_v25, %s2198_s25 }
 0x169   : > { %861 = vrot.lane.b32.xlu0 %v688_v25, %s2199_s16  ;;  %1795 = vmatprep.mubr.msk.f32.mxu1 %vm2196_vm0, %v2197_v1 }
 0x16b   : > { %v2541_v30 = vld [vmem:[#allocation3] sm:$0xff] }
 0x16c   : > { %1214 = vrot.lane.b32.xlu1 %v688_v25, %s2200_s1  ;;  %1794 = vmatpush3.msra.mxu1 %v2541_v30 }
 0x16d   : > { %1216 = vrot.lane.b32.xlu0 %v692_v27, %s2200_s1  ;;  %1803 = vmatprep.subr.mxu1 %v2197_v1 }
 0x1d6   : > { %v864_v31 = vpop.permute.xlu0 %863  ;;  %v1041_v32 = vpop.permute.xlu1 %1040 }
 0x1d7   : > { %1799 = vmatpush3.xpose.msk.msra.mxu0 %vm694_vm3, %v864_v31 }
 0x1d8   : > { %1808 = vmatprep.subr.mxu0 %v2197_v1 }
 0x1da   : > { %v1039_v34 = vpop.permute.xlu1 %1038 }
 0x1db   : > { %v862_v33 = vpop.permute.xlu0 %861 }
 0x1dc   : > { %1801 = vmatmul.mubr.msk.f32.vlgmr.msra.gmra.mrb[2].mxu0 %vm694_vm3, %v862_v33 }
 0x1dd   : > { %1809 = vmatpush3.xpose.msk.msra.mxu0 %vm694_vm3, %v1041_v32  ;;  %1810 = vmatprep.mubr.msk.f32.mxu0 %vm2196_vm0, %v2197_v1 }
 0x1de   : > { %1818 = vmatprep.subr.mxu0 %v2197_v1  ;;  %v1215_v36 = vpop.permute.xlu1 %1214 }
 0x1df   : > { %v1217_v35 = vpop.permute.xlu0 %1216 }
 0x1e0   : > { %1811 = vmatmul.mubr.msk.f32.vlgmr.msra.gmra.mrb[4].mxu0 %vm694_vm3, %v1039_v34 }
 0x1e1   : > { %1819 = vmatpush3.xpose.msk.msra.mxu0 %vm694_vm3, %v1217_v35  ;;  %1820 = vmatprep.mubr.msk.f32.mxu0 %vm2196_vm0, %v2197_v1 }
 0x1e2   : > { %1865 = vmatprep.subr.bf16.mxu0 %v2195_v0 }
 0x1e4   : > { %1821 = vmatmul.mubr.msk.f32.vlgmr.msra.gmra.mrb[6].mxu0 %vm694_vm3, %v1215_v36  ;;  %v1391_v36 = vld [vmem:[%s2726_s6] sm:$0xff] }
 0x1e5   : > { %1844 = vmatprep.mubr.msk.f32.mxu0 %vm2196_vm0, %v2197_v1 }
 0x23b   : > { %v767_v37 = vpop.f32.mrb[4].mxu1 }
 0x23c   : > { %v1792_v38 = vpop.f32.mrb[5].mxu1  ;;  %v772_v39 = vsel %vm771_vm4, %v767_v37, -inf }
 0x23d   : > { %773 = vmax.xlane.f32.xlu0 %v772_v39  ;;  %v1394_v39 = vld [vmem:[%s2726_s6 + $0x18] sm:$0xff] }
 0x2af   : > { %v935_v40 = vpop.f32.mrb[2].mxu0 }
 0x2b0   : > { %v1802_v41 = vpop.f32.mrb[3].mxu0  ;;  %v939_v42 = vsel %vm771_vm4, %v935_v40, -inf }
 0x2b1   : > { %940 = vmax.xlane.f32.xlu1 %v939_v42  ;;  %v1395_v41 = vld [vmem:[%s2726_s6 + $0x20] sm:$0xff]  ;;  %v1396_v42 = vld [vmem:[%s2726_s6 + $0x28] sm:$0xff] }
 0x2b3   : > { %v1112_v43 = vpop.f32.mrb[4].mxu0 }
 0x2b4   : > { %v1812_v44 = vpop.f32.mrb[5].mxu0  ;;  %v1116_v45 = vsel %vm771_vm4, %v1112_v43, -inf }
 0x2b5   : > { %1117 = vmax.xlane.f32.xlu0 %v1116_v45  ;;  %v1397_v44 = vld [vmem:[%s2726_s6 + $0x30] sm:$0xff]  ;;  %v1398_v45 = vld [vmem:[%s2726_s6 + $0x38] sm:$0xff] }
 0x2b7   : > { %v1288_v46 = vpop.f32.mrb[6].mxu0 }
 0x2b8   : > { %v1822_v47 = vpop.f32.mrb[7].mxu0  ;;  %v1292_v48 = vsel %vm771_vm4, %v1288_v46, -inf }
 0x2b9   : > { %1293 = vmax.xlane.f32.xlu0 %v1292_v48 }
 0x2ca   : > { %v774_v49 = vpop.xlane.xlu0 %773 }
 0x2cb   : > { %v775_v50 = vsub.f32 %v767_v37, %v774_v49  ;;  %v1392_v37 = vld [vmem:[%s2726_s6 + $0x8] sm:$0xff] }
 0x2cc   : > { %v1866_v38 = vpack.c.bf16 %v1392_v37, %v1391_v36 }
 0x2cd   : > { %v776_v51 = vmul.f32 1.442695, %v775_v50 }
 0x2ce   : > { %1867 = vmatpush3.bf16.msra.mxu0 %v1866_v38 }
 0x2cf   : > { %1966 = vpow2.f32 %v776_v51  ;;  %1868 = vmatprep.subr.bf16.mxu0 %v2195_v0 }
 0x2d9   : > { %v1967_v52 = vpop.eup %1966 }
 0x2da   : > { %v778_v53 = vsel %vm771_vm4, %v1967_v52, 0.0 }
 0x2db   : > { %779 = vadd.xlane.f32.xlu1 %v778_v53 }
 0x2ec   : > { %956 = vrot.lane.b32.xlu1 %v2541_v30, %s2199_s16 }
 0x33e   : > { %v941_v54 = vpop.xlane.xlu1 %940 }
 0x33f   : > { %v942_v55 = vsub.f32 %v935_v40, %v941_v54 }
 0x341   : > { %v943_v56 = vmul.f32 1.442695, %v942_v55 }
 0x342   : > { %v1118_v57 = vpop.xlane.xlu0 %1117 }
 0x343   : > { %1968 = vpow2.f32 %v943_v56  ;;  %v1119_v58 = vsub.f32 %v1112_v43, %v1118_v57  ;;  %v1872_v43 = vpack.c.bf16 %v1396_v42, %v1395_v41 }
 0x345   : > { %v1120_v59 = vmul.f32 1.442695, %v1119_v58 }
 0x346   : > { %v1294_v60 = vpop.xlane.xlu0 %1293 }
 0x347   : > { %1970 = vpow2.f32 %v1120_v59  ;;  %v1295_v61 = vsub.f32 %v1288_v46, %v1294_v60  ;;  %v1875_v46 = vpack.c.bf16 %v1398_v45, %v1397_v44 }
 0x349   : > { %v1296_v62 = vmul.f32 1.442695, %v1295_v61 }
 0x34b   : > { %1972 = vpow2.f32 %v1296_v62 }
 0x34d   : > { %v1969_v63 = vpop.eup %1968 }
 0x34e   : > { %v945_v2 = vsel %vm771_vm4, %v1969_v63, 0.0 }
 0x34f   : > { %946 = vadd.xlane.f32.xlu0 %v945_v2 }
 0x351   : > { %v1971_v3 = vpop.eup %1970 }
 0x352   : > { %v1122_v4 = vsel %vm771_vm4, %v1971_v3, 0.0 }
 0x353   : > { %1123 = vadd.xlane.f32.xlu1 %v1122_v4 }
 0x355   : > { %v1973_v5 = vpop.eup %1972 }
 0x356   : > { %v1298_v6 = vsel %vm771_vm4, %v1973_v5, 0.0 }
 0x357   : > { %1299 = vadd.xlane.f32.xlu0 %v1298_v6 }
 0x364   : > { %1308 = vrot.lane.b32.xlu1 %v2541_v30, %s2200_s1  ;;  %s2201_s1 = smov 16  }
 0x368   : > { %v780_v7 = vpop.xlane.xlu1 %779 }
 0x369   : > { %1974 = vrcp.f32 %v780_v7 }
 0x36c   : > { %v957_v13 = vpop.permute.xlu1 %956 }
 0x36d   : > { %1132 = vrot.lane.b32.xlu0 %v2541_v30, %s2198_s25 }
 0x373   : > { %v1975_v8 = vpop.eup %1974 }
 0x374   : > { %v782_v9 = vmul.f32 %v1975_v8, %v780_v7 }
 0x376   : > { %v783_v10 = vsub.f32 2.0, %v782_v9 }
 0x378   : > { %v784_v11 = vmul.f32 %v1975_v8, %v783_v10 }
 0x37a   : > { %v785_v12 = vmul.f32 %v1967_v52, %v784_v11 }
 0x37c   : > { %786 = vst.msk [vmem:[%s2575_s14] sm:$0xff] %vm771_vm4, %v785_v12  ;;  %1796 = vmatmul.mubr.msk.f32.vlgmr.msra.gmra.mrb[6].mxu1 %vm771_vm4, %v785_v12 }
 0x37d   : > { %1804 = vmatpush3.msra.mxu1 %v957_v13  ;;  %1805 = vmatprep.mubr.msk.f32.mxu1 %vm2196_vm0, %v2197_v1 }
 0x37e   : > { %1813 = vmatprep.subr.mxu1 %v2197_v1 }
 0x3dc   : > { %v947_v14 = vpop.xlane.xlu0 %946 }
 0x3dd   : > { %1976 = vrcp.f32 %v947_v14 }
 0x3e0   : > { %v1124_v15 = vpop.xlane.xlu1 %1123 }
 0x3e1   : > { %1978 = vrcp.f32 %v1124_v15 }
 0x3e4   : > { %v1300_v16 = vpop.xlane.xlu0 %1299  ;;  %v1309_v31 = vpop.permute.xlu1 %1308 }
 0x3e5   : > { %1980 = vrcp.f32 %v1300_v16 }
 0x3e7   : > { %v1977_v17 = vpop.eup %1976 }
 0x3e8   : > { %v949_v18 = vmul.f32 %v1977_v17, %v947_v14  ;;  %v1133_v28 = vpop.permute.xlu0 %1132 }
 0x3ea   : > { %v950_v19 = vsub.f32 2.0, %v949_v18 }
 0x3eb   : > { %v1979_v20 = vpop.eup %1978 }
 0x3ec   : > { %v951_v21 = vmul.f32 %v1977_v17, %v950_v19  ;;  %v1126_v22 = vmul.f32 %v1979_v20, %v1124_v15 }
 0x3ee   : > { %v952_v23 = vmul.f32 %v1969_v63, %v951_v21  ;;  %v1127_v24 = vsub.f32 2.0, %v1126_v22 }
 0x3ef   : > { %v1981_v25 = vpop.eup %1980 }
 0x3f0   : > { %1697 = vst.msk [vmem:[%s2575_s14 + $0x8] sm:$0xff] %vm771_vm4, %v952_v23  ;;  %v1128_v26 = vmul.f32 %v1979_v20, %v1127_v24  ;;  %v1302_v27 = vmul.f32 %v1981_v25, %v1300_v16  ;;  %1806 = vmatmul.mubr.msk.f32.vlgmr.msra.gmra.mrb[8].mxu1 %vm771_vm4, %v952_v23 }
 0x3f1   : > { %1814 = vmatpush3.msra.mxu1 %v1133_v28  ;;  %1815 = vmatprep.mubr.msk.f32.mxu1 %vm2196_vm0, %v2197_v1 }
 0x3f2   : > { %v1129_v29 = vmul.f32 %v1971_v3, %v1128_v26  ;;  %v1303_v30 = vsub.f32 2.0, %v1302_v27  ;;  %1823 = vmatprep.subr.mxu1 %v2197_v1 }
 0x3f4   : > { %1701 = vst.msk [vmem:[%s2575_s14 + $0x10] sm:$0xff] %vm771_vm4, %v1129_v29  ;;  %v1304_v32 = vmul.f32 %v1981_v25, %v1303_v30  ;;  %1816 = vmatmul.mubr.msk.f32.vlgmr.msra.gmra.mrb[10].mxu1 %vm771_vm4, %v1129_v29 }
 0x3f5   : > { %1824 = vmatpush3.msra.mxu1 %v1309_v31  ;;  %1825 = vmatprep.mubr.msk.f32.mxu1 %vm2196_vm0, %v2197_v1  ;;  %v1393_v1 = vld [vmem:[%s2726_s6 + $0x10] sm:$0xff] }
 0x3f6   : > { %v1305_v33 = vmul.f32 %v1973_v5, %v1304_v32  ;;  %v1869_v40 = vpack.c.bf16 %v1394_v39, %v1393_v1 }
 0x3f8   : > { %1705 = vst.msk [vmem:[%s2575_s14 + $0x18] sm:$0xff] %vm771_vm4, %v1305_v33  ;;  %1826 = vmatmul.mubr.msk.f32.vlgmr.msra.gmra.mrb[12].mxu1 %vm771_vm4, %v1305_v33  ;;  %1870 = vmatpush3.bf16.msra.mxu0 %v1869_v40  ;;  %s2076_s14 = sshll.u32 %s2204_s13, 4  ;;  %s2077_s14 = int_to_ptr.vmem [resolvable:$false] %s2076_s14 }
 0x3f9   : > { %1871 = vmatprep.subr.bf16.mxu0 %v2195_v0  ;;  %s2078_s21 = scalar_lea.vmem %s2077_s14, 1024  ;;  %p2079_p8 = scmp.lt.s32.totalorder %s2628_s29, %s2077_s14 }
 0x3fa   : > { %p2080_p9 = scmp.lt.s32.totalorder %s2078_s21, %s2072_s8 }
 0x3fc   : > { %1873 = vmatpush3.bf16.msra.mxu0 %v1872_v43  ;;  %p2081_p6 = por %p2080_p9, %p2079_p8 }
 0x3fd   : > { %1874 = vmatprep.subr.bf16.mxu0 %v2195_v0 }
 0x3fe   : > { %p2082_p13 = pnand %p2081_p6, %p2075_p1 }
 0x400   : > { %1876 = vmatpush3.bf16.msra.mxu0 %v1875_v46 }
 0x44f   : > { %v856_v34 = vpop.f32.mrb[6].mxu1 }
 0x450   : > { %860 = vst.msk [vmem:[#allocation4] sm:$0xff] %vm694_vm3, %v856_v34  ;;  %v1797_v35 = vpop.f32.mrb[7].mxu1 }
 0x4c3   : > { %v1028_v47 = vpop.f32.mrb[8].mxu1 }
 0x4c4   : > { %1033 = vrot.lane.b32.xlu1 %v1028_v47, %s2201_s1  ;;  %v1807_v48 = vpop.f32.mrb[9].mxu1 }
 0x4c7   : > { %v1204_v49 = vpop.f32.mrb[10].mxu1 }
 0x4c8   : > { %1209 = vrot.lane.b32.xlu0 %v1204_v49, %s2202_s27  ;;  %v1817_v50 = vpop.f32.mrb[11].mxu1 }
 0x4cb   : > { %v1380_v51 = vpop.f32.mrb[12].mxu1 }
 0x4cc   : > { %1385 = vrot.lane.b32.xlu1 %v1380_v51, %s2203_s26  ;;  %v1827_v52 = vpop.f32.mrb[13].mxu1 }
 0x536   : > { %v1034_v53 = vpop.permute.xlu1 %1033 }
 0x537   : > { %1037 = vst.msk [vmem:[#allocation4] sm:$0xff] %vm1036_vm5, %v1034_v53 }
 0x53a   : > { %v1210_v0 = vpop.permute.xlu0 %1209 }
 0x53b   : > { %1213 = vst.msk [vmem:[#allocation4] sm:$0xff] %vm1212_vm6, %v1210_v0 }
 0x53e   : > { %v1386_v54 = vpop.permute.xlu1 %1385 }
 0x53f   : > { %1389 = vst.msk [vmem:[#allocation4] sm:$0xff] %vm1388_vm7, %v1386_v54 }
 0x546   : > { %v1390_v55 = vld [vmem:[#allocation4] sm:$0xff] }
 0x547   : > { %1845 = vmatmul.mubr.msk.f32.vlgmr.msra.gmra.mrb[8].mxu0 %vm533_vm2, %v1390_v55 }
 0x548   : > { %2085 = shalt.err (!%p2082_p13)
}
 0x549   : > { %s2086_s7 = scalar_lea.hbm %s2635_s15, 512  ;;  %s2090_s25 = scalar_lea.hbm %s2766_s19, 1024 }
 0x54a   : > { %p2087_p11 = scmp.ne.s32.totalorder %s2635_s15, %s2086_s7  ;;  %p2091_p7 = scmp.lt.u32.totalorder %s2635_s15, %s2766_s19 }
 0x54b   : > { %p2092_p3 = scmp.lt.u32.totalorder %s2090_s25, %s2086_s7  ;;  %p2094_p4 = scmp.lt.u32.totalorder %s2086_s7, %s2635_s15 }
 0x54c   : > { %p2088_p2 = pnand %p2087_p11, %p2767_p10 }
 0x54d   : > { %p2093_p0 = por %p2092_p3, %p2091_p7 }
 0x54e   : > { %p2089_p5 = pneg %p2088_p2 }
 0x54f   : > { %p2095_p12 = por %p2094_p4, %p2093_p0 }
 0x551   : > { %p2096_p1 = pnand %p2095_p12, %p2089_p5 }
 0x553   : > { %2099 = shalt.err (!%p2096_p1)
}
 0x554   : > { %s2205_s27 = smov 128   ;;  %s2206_s26 = smov 256  }
 0x555   : > { %s2207_s9 = smov 8   ;;  %s2768_s13 = sld [smem:[#allocation25_spill]] }
 0x556   : > { %1884 = dma.vmem_to_hbm [thread:$0]  (%p2767_p10), %s2628_s29, 512, %s2635_s15, %s1487_s30, %s2205_s27, %s2206_s26, %s2207_s9  }
 0x557   : > { %s441_s14 = scalar_lea.vmem [#allocation11], %s2454_s17  ;;  %s2769_s24 = sld [smem:[#allocation26_spill]] }
 0x558   : > { %s1501_s21 = sshll.u32 %s441_s14, 4  ;;  %s1482_s29 = scalar_lea.sflag [#allocation7], %s2451_s23  ;;  %s2672_s21 = int_to_ptr.vmem [resolvable:$true] %s1501_s21 }
 0x559   : > { %s2100_s15 = scalar_lea.vmem %s2672_s21, 128  ;;  %s2208_s17 = smov [#allocation11]  }
 0x55a   : > { %p2101_p8 = scmp.ne.s32.totalorder %s2672_s21, %s2100_s15  ;;  %s2104_s12 = sshll.u32 %s2208_s17, 4  ;;  %s2105_s12 = int_to_ptr.vmem [resolvable:$false] %s2104_s12 }
 0x55b   : > { %v1707_v56 = vld [vmem:[%s2768_s13] ss:$0 sm:$0xff]  ;;  %s2106_s30 = scalar_lea.vmem %s2105_s12, 256  ;;  %p2107_p13 = scmp.lt.s32.totalorder %s2672_s21, %s2105_s12 }
 0x55c   : > { %p2102_p9 = pnand %p2101_p8, %p2767_p10  ;;  %p2108_p11 = scmp.lt.s32.totalorder %s2106_s30, %s2100_s15 }
 0x55d   : > { %s2670_s25 = scalar_lea.hbm %s2769_s24, %s1711_s18 }
 0x55e   : > { %p2103_p6 = pneg %p2102_p9  ;;  %p2109_p2 = por %p2108_p11, %p2107_p13 }
 0x560   : > { %p2110_p5 = pnand %p2109_p2, %p2103_p6 }
 0x61a   : > { %v1476_v57 = vpop.f32.mrb[8].mxu0 }
 0x61b   : > { %v1477_v58 = vadd.f32 %v1707_v56, %v1476_v57  ;;  %v1846_v59 = vpop.f32.mrb[9].mxu0 }
 0x61d   : > { %1480 = vst.msk [vmem:[%s441_s14] sm:$0xff] %vm459_vm1, %v1477_v58 }
 0x61e   : > { %2113 = shalt.err (!%p2110_p5)
}
 0x61f   : > { %s2114_s23 = scalar_lea.hbm %s2670_s25, 128  ;;  %s2118_s1 = scalar_lea.hbm %s2769_s24, 256 }
 0x620   : > { %p2115_p7 = scmp.ne.s32.totalorder %s2670_s25, %s2114_s23  ;;  %p2119_p4 = scmp.lt.u32.totalorder %s2670_s25, %s2769_s24 }
 0x621   : > { %p2120_p12 = scmp.lt.u32.totalorder %s2118_s1, %s2114_s23  ;;  %p2122_p8 = scmp.lt.u32.totalorder %s2114_s23, %s2670_s25 }
 0x622   : > { %p2116_p3 = pnand %p2115_p7, %p2767_p10 }
 0x623   : > { %p2121_p1 = por %p2120_p12, %p2119_p4 }
 0x624   : > { %p2117_p0 = pneg %p2116_p3 }
 0x625   : > { %p2123_p9 = por %p2122_p8, %p2121_p1 }
 0x627   : > { %p2124_p6 = pnand %p2123_p9, %p2117_p0 }
 0x629   : > { %2127 = shalt.err (!%p2124_p6)
}
 0x62a   : > { %1883 = dma.vmem_to_hbm [thread:$0]  (%p2767_p10), %s2672_s21, 128, %s2670_s25, %s1482_s29  }
 0x62b PF: > { %s2770_s9 = sld [smem:[#allocation18_spill]]  ;;  %s2771_s28 = sld [smem:[#allocation23_spill]] }
 0x62c   : > { %s2772_s8 = sld [smem:[#allocation20_spill]] }
 0x631   : > { %s1529_s13 = sand.u32 1, %s2770_s9   ;;  %p2773_p13 = scmp.ne.s32.totalorder %s2771_s28, 0 }
 0x632   : > { %p2774_p11 = scmp.ge.s32.totalorder %s2772_s8, 2  ;;  %s1530_s14 = scalar_lea.sflag [#allocation7], %s1529_s13 }
 0x634   : > { %p1898_p2 = pnand %p2774_p11, %p2773_p13 }
 0x636   : > { %2161 = dma.done.wait (!%p1898_p2), %s1530_s14, 128  }
 0x637   : > { %2163 = vsyncadd (!%p1898_p2), %s1530_s14, 4294967168  ;;  %s1539_s7 = scalar_lea.sflag [#allocation13], %s1529_s13 }
 0x638   : > { %2165 = dma.done.wait (!%p1898_p2), %s1539_s7, 512  }
 0x639   : > { %2167 = vsyncadd (!%p1898_p2), %s1539_s7, 4294966784  ;;  %s32_s14 = sadd.s32 1, %s2772_s8   ;;  %s2775_s22 = sld [smem:[#allocation22_spill]] }
 0x63a   : > { %p29_p5 = scmp.ge.s32.totalorder %s32_s14, 4   ;;  %s2776_s12 = sld [smem:[#allocation19_spill]] }
 0x63b   : > { %s2777_s13 = sld [smem:[#allocation21_spill]]  ;;  %s2778_s30 = smov %s2174_s10 }
 0x63c   : > { %s2779_s10 = smov %s2178_s11  ;;  %31 = sbr.rel (!%p29_p5) target bundleno = 15 (0xf), region = 145 }
 0x63f   : > { %s2780_s11 = smov %s2775_s22 }
 0x643   :  { %1544 = vsyncpa [#allocation6], 1 }
 0x644   :  { %1546 = vsyncpa [#allocation6 + $0x1], 1 }
 0x645   :  { %1547 = vsyncpa [#allocation9], 1 }
 0x646   :  { %1549 = vsyncpa [#allocation9 + $0x1], 1 }
 0x647   :  { %1550 = vsyncpa [#allocation7], 1 }
 0x648   :  { %1552 = vsyncpa [#allocation7 + $0x1], 1 }
 0x649   :  { %1553 = vsyncpa [#allocation13], 1 }
 0x64a   :  { %1555 = vsyncpa [#allocation13 + $0x1], 1 }

</bundles_post_ra>
